<compile_context>
chip_gen: v5e
topology: v5e:2x2
jax: 0.10.0
libtpu: 0.0.40
codegen_flags: <defaults>
</compile_context>

<pallas_src>
import jax
import jax.numpy as jnp
from jax.experimental import pallas as pl
from jax.experimental.pallas import tpu as pltpu


def _round_up(n, m):
    return ((n + m - 1) // m) * m


def _weighted_embedding_kernel(idx_ref, w_ref, emb_ref, out_ref, acc_ref):
    v_blk = pl.program_id(1)

    @pl.when(v_blk == 0)
    def _():
        acc_ref[...] = jnp.zeros_like(acc_ref)

    idx = idx_ref[...]                      # (block_b, L) int32
    w = w_ref[...]                          # (block_b, L) float32
    block_b, L = idx.shape
    block_v = emb_ref.shape[0]

    # Global vocab ids covered by this table slab: (block_b, block_v).
    vocab_ids = (jax.lax.broadcasted_iota(jnp.int32, (block_b, block_v), 1)
                 + v_blk * block_v)

    # Weighted scatter matrix S[b, v] = sum_l w[b, l] * [idx[b, l] == v].
    # Built with a static (fully unrolled) L-loop on a (block_b, block_v)
    # accumulator: no (B, L, V) one-hot temporary, compare+select fused on the
    # VPU, no cmp->f32 convert, no sublane reduction.
    scat = jnp.zeros((block_b, block_v), jnp.float32)
    for l in range(L):                      # L is small & static
        scat = scat + jnp.where(idx[:, l:l + 1] == vocab_ids,
                                w[:, l:l + 1], 0.0)

    # Pooled weighted embeddings for this vocab slab on the MXU
    # (bf16 inputs, f32 accumulation in VMEM scratch).
    acc_ref[...] += jnp.dot(scat.astype(emb_ref.dtype), emb_ref[...],
                            preferred_element_type=jnp.float32)

    @pl.when(v_blk == pl.num_programs(1) - 1)
    def _():
        out_ref[...] = acc_ref[...].astype(out_ref.dtype)


def weighted_embedding_encoder(x, embedding_table, use_hash=False,
                               block_b=None, block_v=None,
                               mxu_dtype=jnp.bfloat16):
    """x: (bsz, 2L) float32 (first half indices, second half weights);
    embedding_table: (V, D) float32 -> (bsz, D) float32."""
    bsz, seqlen = x.shape
    L = seqlen // 2
    V, D = embedding_table.shape

    # Split indices / weights (module: torch.split(x, len/2, dim=1), index.long()).
    # NOTE: ids are carried as float32 upstream, so values > 2^24 lose precision
    # before this cast (inherent to the module's input format).
    idx = x[:, :L].astype(jnp.int32)
    weights = x[:, L:]
    if use_hash:
        # padding_idx is None branch -> plain modulo hashing.
        # TODO(synk): padding_idx != None masked-select re-hash branch not implemented.
        idx = idx % V

    # ---- tile selection --------------------------------------------------
    # Lane-dense output (D padded to 128) and sublane-aligned batch tiles
    # (multiple of 8) so stores are unmasked vst's.  The vocab (reduction) axis
    # is tiled into (block_v, D_pad) slabs that the BlockSpec pipeline
    # double-buffers; slab budget sized to fit the smallest targets
    # (v5e ~16 MiB default scoped VMEM, v7x 64 MiB physical).
    D_pad = _round_up(D, 128)
    B_pad = _round_up(bsz, 8)
    if block_b is None:
        block_b = min(B_pad, 256)            # MXU-friendly M when batch allows
    B_pad = _round_up(B_pad, block_b)

    emb_itemsize = jnp.dtype(mxu_dtype).itemsize
    if block_v is None:
        slab_budget = 4 * 1024 * 1024        # bytes per table slab (x2 buffers)
        block_v = slab_budget // max(D_pad * emb_itemsize, 1)
        block_v = max(256, min(2048, _round_up(block_v, 256)))   # K mult of 256
        block_v = min(block_v, _round_up(V, 256))
    V_pad = _round_up(V, block_v)

    # ---- pad operands ----------------------------------------------------
    if B_pad != bsz:
        pad_b = B_pad - bsz                  # padded rows: idx=0, w=0 -> contribute 0
        idx = jnp.pad(idx, ((0, pad_b), (0, 0)))
        weights = jnp.pad(weights, ((0, pad_b), (0, 0)))
    # Stream the table at the MXU dtype (bf16 halves HBM->VMEM traffic).
    emb = embedding_table.astype(mxu_dtype)
    if (V_pad, D_pad) != (V, D):
        emb = jnp.pad(emb, ((0, V_pad - V), (0, D_pad - D)))

    grid = (B_pad // block_b, V_pad // block_v)

    out_pad = pl.pallas_call(
        _weighted_embedding_kernel,
        out_shape=jax.ShapeDtypeStruct((B_pad, D_pad), jnp.float32),
        grid_spec=pltpu.PrefetchScalarGridSpec(
            num_scalar_prefetch=0,
            grid=grid,
            in_specs=[
                pl.BlockSpec((block_b, L), lambda b, v: (b, 0)),        # indices
                pl.BlockSpec((block_b, L), lambda b, v: (b, 0)),        # weights
                pl.BlockSpec((block_v, D_pad), lambda b, v: (v, 0)),    # table slab
            ],
            out_specs=pl.BlockSpec((block_b, D_pad), lambda b, v: (b, 0)),
            scratch_shapes=[pltpu.VMEM((block_b, D_pad), jnp.float32)],
        ),
        compiler_params=pltpu.CompilerParams(
            # batch axis parallel (megacore on v7x), vocab is the reduction axis
            dimension_semantics=("parallel", "arbitrary"),
            vmem_limit_bytes=32 * 1024 * 1024,
        ),
    )(idx, weights, emb)

    return out_pad[:bsz, :D]


if __name__ == "__main__":
    key = jax.random.PRNGKey(0)
    k_emb, k_idx, k_w = jax.random.split(key, 3)

    bsz = 2
    L = 4            # seq = 2L = 8 : first half indices, second half weights
    vocab = 64
    dim = 32

    # Deterministic parameter init (nn.Embedding(vocab, dim) weight).
    embedding_table = jax.random.normal(k_emb, (vocab, dim), dtype=jnp.float32)

    # Module input x: (bsz, 2L), first L columns = indices, last L = weights.
    idx = jax.random.randint(k_idx, (bsz, L), 0, vocab)
    weights = jax.random.normal(k_w, (bsz, L), dtype=jnp.float32)
    x = jnp.concatenate([idx.astype(jnp.float32), weights], axis=1)

    out = weighted_embedding_encoder(x, embedding_table)
    out = jax.block_until_ready(out)
    assert out.shape == (bsz, dim)

    # Module-semantics reference (f32 gather + weight + sum-pool along dim=1).
    # Kernel runs the matmul in bf16 with f32 accumulation -> bf16-level tolerance.
    ref = jnp.sum(embedding_table[idx] * weights[:, :, None], axis=1)
    assert jnp.allclose(out, ref, atol=5e-2, rtol=5e-2)

    # Tight check against a reference that mirrors the kernel's bf16 rounding
    # (scatter weights in f32, round once, bf16 table, exact products, f32 sums).
    scat = jnp.zeros((bsz, vocab), jnp.float32).at[
        jnp.arange(bsz)[:, None], idx].add(weights)
    ref_bf16 = jnp.dot(scat.astype(jnp.bfloat16).astype(jnp.float32),
                       embedding_table.astype(jnp.bfloat16).astype(jnp.float32),
                       precision=jax.lax.Precision.HIGHEST)
    assert jnp.allclose(out, ref_bf16, atol=1e-4, rtol=1e-4)

    print("KERNEL_OK")
</pallas_src>

<mosaic_0001>
module attributes {stable_mosaic.version = 11 : i64} {
  func.func @_weighted_embedding_kernel(%arg0: i32, %arg1: i32, %arg2: memref<8x4xi32, #tpu.memory_space<vmem>>, %arg3: memref<8x4xf32, #tpu.memory_space<vmem>>, %arg4: memref<256x128xbf16, #tpu.memory_space<vmem>>, %arg5: memref<8x128xf32, #tpu.memory_space<vmem>>, %arg6: memref<8x128xf32, #tpu.memory_space<vmem>>) attributes {dimension_semantics = [#tpu.dimension_semantics<parallel>, #tpu.dimension_semantics<arbitrary>], iteration_bounds = array<i64: 1, 1>, scalar_prefetch = 0 : i64, scratch_operands = 1 : i64, tpu.core_type = #tpu.core_type<tc>, window_params = [{transform_indices = @transform_0, window_bounds = array<i64: 8, 4>}, {transform_indices = @transform_1, window_bounds = array<i64: 8, 4>}, {transform_indices = @transform_2, window_bounds = array<i64: 256, 128>}, {transform_indices = @transform_3, window_bounds = array<i64: 8, 128>}]} {
    %c0_i32 = arith.constant 0 : i32
    %0 = arith.cmpi eq, %arg1, %c0_i32 : i32
    %1 = arith.extui %0 : i1 to i32
    %c0_i32_0 = arith.constant 0 : i32
    %2 = arith.cmpi ne, %1, %c0_i32_0 : i32
    scf.if %2 {
      %cst_17 = arith.constant 0.000000e+00 : f32
      %55 = vector.broadcast %cst_17 : f32 to vector<8x128xf32>
      %c0_18 = arith.constant 0 : index
      %c0_19 = arith.constant 0 : index
      %56 = vector.load %arg6[%c0_18, %c0_19] : memref<8x128xf32, #tpu.memory_space<vmem>>, vector<8x128xf32>
      tpu.vector_store %arg6[%c0_18, %c0_19], %55 {strides = array<i32>} : memref<8x128xf32, #tpu.memory_space<vmem>>, vector<8x128xf32>,
    } else {
    }
    %c0 = arith.constant 0 : index
    %c0_1 = arith.constant 0 : index
    %3 = vector.load %arg2[%c0, %c0_1] : memref<8x4xi32, #tpu.memory_space<vmem>>, vector<8x4xi32>
    %c0_2 = arith.constant 0 : index
    %c0_3 = arith.constant 0 : index
    %4 = vector.load %arg3[%c0_2, %c0_3] : memref<8x4xf32, #tpu.memory_space<vmem>>, vector<8x4xf32>
    %5 = tpu.iota {dimensions = array<i32: 1>} : vector<8x256xi32>
    %c256_i32 = arith.constant 256 : i32
    %6 = arith.muli %arg1, %c256_i32 : i32
    %7 = vector.broadcast %6 : i32 to vector<8x256xi32>
    %8 = arith.addi %5, %7 : vector<8x256xi32>
    %cst = arith.constant 0.000000e+00 : f32
    %9 = vector.broadcast %cst : f32 to vector<8x256xf32>
    %10 = vector.extract_strided_slice %3 {offsets = [0, 0], sizes = [8, 1], strides = [1, 1]} : vector<8x4xi32> to vector<8x1xi32>
    %11 = vector.broadcast %10 : vector<8x1xi32> to vector<8x256xi32>
    %12 = arith.cmpi eq, %11, %8 : vector<8x256xi32>
    %13 = vector.extract_strided_slice %4 {offsets = [0, 0], sizes = [8, 1], strides = [1, 1]} : vector<8x4xf32> to vector<8x1xf32>
    %cst_4 = arith.constant 0.000000e+00 : f32
    %14 = vector.shape_cast %13 : vector<8x1xf32> to vector<8x1xf32>
    %15 = vector.broadcast %14 : vector<8x1xf32> to vector<8x256xf32>
    %16 = vector.broadcast %cst_4 : f32 to vector<8x256xf32>
    %17 = arith.select %12, %15, %16 : vector<8x256xi1>, vector<8x256xf32>
    %18 = arith.addf %9, %17 : vector<8x256xf32>
    %19 = vector.extract_strided_slice %3 {offsets = [0, 1], sizes = [8, 1], strides = [1, 1]} : vector<8x4xi32> to vector<8x1xi32>
    %20 = vector.broadcast %19 : vector<8x1xi32> to vector<8x256xi32>
    %21 = arith.cmpi eq, %20, %8 : vector<8x256xi32>
    %22 = vector.extract_strided_slice %4 {offsets = [0, 1], sizes = [8, 1], strides = [1, 1]} : vector<8x4xf32> to vector<8x1xf32>
    %cst_5 = arith.constant 0.000000e+00 : f32
    %23 = vector.shape_cast %22 : vector<8x1xf32> to vector<8x1xf32>
    %24 = vector.broadcast %23 : vector<8x1xf32> to vector<8x256xf32>
    %25 = vector.broadcast %cst_5 : f32 to vector<8x256xf32>
    %26 = arith.select %21, %24, %25 : vector<8x256xi1>, vector<8x256xf32>
    %27 = arith.addf %18, %26 : vector<8x256xf32>
    %28 = vector.extract_strided_slice %3 {offsets = [0, 2], sizes = [8, 1], strides = [1, 1]} : vector<8x4xi32> to vector<8x1xi32>
    %29 = vector.broadcast %28 : vector<8x1xi32> to vector<8x256xi32>
    %30 = arith.cmpi eq, %29, %8 : vector<8x256xi32>
    %31 = vector.extract_strided_slice %4 {offsets = [0, 2], sizes = [8, 1], strides = [1, 1]} : vector<8x4xf32> to vector<8x1xf32>
    %cst_6 = arith.constant 0.000000e+00 : f32
    %32 = vector.shape_cast %31 : vector<8x1xf32> to vector<8x1xf32>
    %33 = vector.broadcast %32 : vector<8x1xf32> to vector<8x256xf32>
    %34 = vector.broadcast %cst_6 : f32 to vector<8x256xf32>
    %35 = arith.select %30, %33, %34 : vector<8x256xi1>, vector<8x256xf32>
    %36 = arith.addf %27, %35 : vector<8x256xf32>
    %37 = vector.extract_strided_slice %3 {offsets = [0, 3], sizes = [8, 1], strides = [1, 1]} : vector<8x4xi32> to vector<8x1xi32>
    %38 = vector.broadcast %37 : vector<8x1xi32> to vector<8x256xi32>
    %39 = arith.cmpi eq, %38, %8 : vector<8x256xi32>
    %40 = vector.extract_strided_slice %4 {offsets = [0, 3], sizes = [8, 1], strides = [1, 1]} : vector<8x4xf32> to vector<8x1xf32>
    %cst_7 = arith.constant 0.000000e+00 : f32
    %41 = vector.shape_cast %40 : vector<8x1xf32> to vector<8x1xf32>
    %42 = vector.broadcast %41 : vector<8x1xf32> to vector<8x256xf32>
    %43 = vector.broadcast %cst_7 : f32 to vector<8x256xf32>
    %44 = arith.select %39, %42, %43 : vector<8x256xi1>, vector<8x256xf32>
    %45 = arith.addf %36, %44 : vector<8x256xf32>
    %c0_8 = arith.constant 0 : index
    %c0_9 = arith.constant 0 : index
    %46 = vector.load %arg6[%c0_8, %c0_9] : memref<8x128xf32, #tpu.memory_space<vmem>>, vector<8x128xf32>
    %47 = arith.truncf %45 : vector<8x256xf32> to vector<8x256xbf16>
    %c0_10 = arith.constant 0 : index
    %c0_11 = arith.constant 0 : index
    %48 = vector.load %arg4[%c0_10, %c0_11] : memref<256x128xbf16, #tpu.memory_space<vmem>>, vector<256x128xbf16>
    %cst_12 = arith.constant dense<0.000000e+00> : vector<8x128xf32>
    %49 = tpu.matmul %47, %48, %cst_12 {dimension_numbers = #tpu.dot_dimension_numbers<[1], [0], [0], [1], [0, 0, 1, 1], [], []>} : vector<8x256xbf16>, vector<256x128xbf16>, vector<8x128xf32> -> vector<8x128xf32>
    %50 = arith.addf %46, %49 : vector<8x128xf32>
    %c0_13 = arith.constant 0 : index
    %c0_14 = arith.constant 0 : index
    %51 = vector.load %arg6[%c0_13, %c0_14] : memref<8x128xf32, #tpu.memory_space<vmem>>, vector<8x128xf32>
    tpu.vector_store %arg6[%c0_13, %c0_14], %50 {strides = array<i32>} : memref<8x128xf32, #tpu.memory_space<vmem>>, vector<8x128xf32>,
    %c0_i32_15 = arith.constant 0 : i32
    %52 = arith.cmpi eq, %arg1, %c0_i32_15 : i32
    %53 = arith.extui %52 : i1 to i32
    %c0_i32_16 = arith.constant 0 : i32
    %54 = arith.cmpi ne, %53, %c0_i32_16 : i32
    scf.if %54 {
      %c0_17 = arith.constant 0 : index
      %c0_18 = arith.constant 0 : index
      %55 = vector.load %arg6[%c0_17, %c0_18] : memref<8x128xf32, #tpu.memory_space<vmem>>, vector<8x128xf32>
      %c0_19 = arith.constant 0 : index
      %c0_20 = arith.constant 0 : index
      %56 = vector.load %arg5[%c0_19, %c0_20] : memref<8x128xf32, #tpu.memory_space<vmem>>, vector<8x128xf32>
      tpu.vector_store %arg5[%c0_19, %c0_20], %55 {strides = array<i32>} : memref<8x128xf32, #tpu.memory_space<vmem>>, vector<8x128xf32>,
    } else {
    }
    return
  }
  func.func @transform_0(%arg0: i32, %arg1: i32) -> (i32, i32) {
    %c0_i32 = arith.constant 0 : i32
    %c0_i32_0 = arith.constant 0 : i32
    return %arg0, %c0_i32 : i32, i32
  }
  func.func @transform_1(%arg0: i32, %arg1: i32) -> (i32, i32) {
    %c0_i32 = arith.constant 0 : i32
    %c0_i32_0 = arith.constant 0 : i32
    return %arg0, %c0_i32 : i32, i32
  }
  func.func @transform_2(%arg0: i32, %arg1: i32) -> (i32, i32) {
    %c0_i32 = arith.constant 0 : i32
    %c0_i32_0 = arith.constant 0 : i32
    return %arg1, %c0_i32 : i32, i32
  }
  func.func @transform_3(%arg0: i32, %arg1: i32) -> (i32, i32) {
    %c0_i32 = arith.constant 0 : i32
    %c0_i32_0 = arith.constant 0 : i32
    return %arg0, %c0_i32 : i32, i32
  }
}

</mosaic_0001>

<bundles_post_ra>
// kernel: tpu_custom_call.1
= control target key start
LH: loop header
LB: loop body
LE: loop exit
PB: predicated region body
PF: predicated region fallthrough
CT: control target
= control target key end

     0   :  { %8 = vsyncpa [#allocation4], 0  ;;  %s467_s0 = inlined_call_operand.vmem [shape: s32[8,4], index: 0, kind: input, shape index: {}]   ;;  %s468_s1 = inlined_call_operand.vmem [shape: f32[8,4], index: 1, kind: input, shape index: {}]   ;;  %s469_s2 = inlined_call_operand.hbm [shape: bf16[256,128], index: 2, kind: input, shape index: {}]   ;;  %s470_s3 = inlined_call_operand.hbm [shape: f32[8,128], index: 3, kind: output, shape index: {}]  }
   0x1   :  { %9 = vsyncpa [#allocation5], 0  ;;  %s18_s14 = sshll.u32 %s469_s2, 4  ;;  %s427_s15 = smov [#allocation3]   ;;  %s19_s14 = int_to_ptr.hbm [resolvable:$true] %s18_s14 }
   0x2   :  { %s20_s16 = sshll.u32 %s427_s15, 4  ;;  %s428_s17 = smov 64   ;;  %s21_s16 = int_to_ptr.vmem [resolvable:$true] %s20_s16 }
   0x3   :  { %s429_s18 = smov 4  }
   0x4   :  { %26 = dma.hbm_to_vmem [thread:$0]  %s19_s14, 2048, %s21_s16, [#allocation4], %s428_s17, %s428_s17, %s429_s18  }
   0x5   :  { %423 = dma.done.wait [#allocation4], 2048  }
   0x6   :  { %424 = vsyncadd [#allocation4], 4294965248  ;;  %v430_v0 = vmov 0   ;;  %v431_v1 = vmov 2   ;;  %v37_v2 = vld [vmem:[%s468_s1] sm:$0xff]  ;;  %v350_v4 = vld [vmem:[#allocation3 + $0x38] sm:$0xff]  ;;  %v38_v23 = vlaneseq }
   0x7   :  { %369 = vset.pattern.permute.xlu1 %v430_v0  ;;  %367 = vset.pattern.permute.xlu0 %v430_v0  ;;  %v36_v3 = vld [vmem:[%s467_s0] sm:$0xff]  ;;  %v358_v5 = vld [vmem:[#allocation3 + $0x78] sm:$0xff]  ;;  %v432_v6 = vmov 1   ;;  %v433_v7 = vmov 3   ;;  %v349_v8 = vld [vmem:[#allocation3 + $0x30] sm:$0xff]  ;;  %s434_s0 = smov [#allocation6]  }
   0x8   :  { %371 = vset.pattern.permute.xlu2 %v431_v1  ;;  %52 = vperm.xlu1 %369, %v37_v2   ;;  %v357_v9 = vld [vmem:[#allocation3 + $0x70] sm:$0xff]  ;;  %v348_v10 = vld [vmem:[#allocation3 + $0x28] sm:$0xff]  ;;  %v347_v12 = vld [vmem:[#allocation3 + $0x20] sm:$0xff]  ;;  %v39_v26 = vand.u32 127, %v38_v23  ;;  %s267_s1 = sshll.u32 %s434_s0, 4  ;;  %s269_s24 = sshll.u32 %s470_s3, 4  ;;  %s268_s1 = int_to_ptr.vmem [resolvable:$true] %s267_s1  ;;  %s270_s24 = int_to_ptr.hbm [resolvable:$true] %s269_s24 }
   0x9   :  { %46 = vperm.xlu0 %367, %v36_v3   ;;  %73 = vperm.xlu2 %371, %v36_v3   ;;  %v356_v11 = vld [vmem:[#allocation3 + $0x68] sm:$0xff]  ;;  %v355_v13 = vld [vmem:[#allocation3 + $0x60] sm:$0xff]  ;;  %v346_v14 = vld [vmem:[#allocation3 + $0x18] sm:$0xff] }
   0xa   :  { %229 = vmatpush.bf16.msra.mxu0 %v350_v4  ;;  %242 = vmatpush.bf16.msra.mxu1 %v358_v5  ;;  %v354_v15 = vld [vmem:[#allocation3 + $0x58] sm:$0xff]  ;;  %v345_v16 = vld [vmem:[#allocation3 + $0x10] sm:$0xff]  ;;  %v344_v18 = vld [vmem:[#allocation3 + $0x8] sm:$0xff]  ;;  %v40_v27 = vadd.s32 128, %v39_v26 }
   0xb   :  { %v353_v17 = vld [vmem:[#allocation3 + $0x50] sm:$0xff]  ;;  %v352_v19 = vld [vmem:[#allocation3 + $0x48] sm:$0xff]  ;;  %v343_v20 = vld [vmem:[#allocation3] sm:$0xff] }
   0xc   :  { %v351_v21 = vld [vmem:[#allocation3 + $0x40] sm:$0xff] }
   0xe   :  { %230 = vmatpush.bf16.msra.mxu0 %v349_v8  ;;  %243 = vmatpush.bf16.msra.mxu1 %v357_v9 }
  0x10   :  { %370 = vset.pattern.permute.xlu1 %v432_v6 }
  0x11   :  { %368 = vset.pattern.permute.xlu0 %v432_v6  ;;  %65 = vperm.xlu1 %370, %v37_v2  }
  0x12   :  { %60 = vperm.xlu0 %368, %v36_v3   ;;  %78 = vperm.xlu2 %371, %v37_v2  }
  0x13   :  { %231 = vmatpush.bf16.msra.mxu0 %v348_v10  ;;  %244 = vmatpush.bf16.msra.mxu1 %v356_v11 }
  0x17   :  { %232 = vmatpush.bf16.msra.mxu0 %v347_v12  ;;  %245 = vmatpush.bf16.msra.mxu1 %v355_v13 }
  0x19   :  { %372 = vset.pattern.permute.xlu1 %v433_v7 }
  0x1a   :  { %374 = vset.pattern.permute.xlu0 %v433_v7  ;;  %86 = vperm.xlu1 %372, %v36_v3  }
  0x1b   :  { %373 = vset.pattern.permute.xlu2 %v433_v7  ;;  %233 = vmatpush.bf16.msra.mxu0 %v346_v14 }
  0x1c   :  { %91 = vperm.xlu2 %373, %v37_v2   ;;  %246 = vmatpush.bf16.msra.mxu1 %v354_v15 }
  0x1f   :  { %234 = vmatpush.bf16.msra.mxu0 %v345_v16 }
  0x20   :  { %247 = vmatpush.bf16.msra.mxu1 %v353_v17 }
  0x23   :  { %235 = vmatpush.bf16.msra.mxu0 %v344_v18 }
  0x24   :  { %248 = vmatpush.bf16.msra.mxu1 %v352_v19 }
  0x27   :  { %236 = vmatpush.bf16.msra.mxu0 %v343_v20 }
  0x28   :  { %249 = vmatpush.bf16.msra.mxu1 %v351_v21 }
  0x63   :  { %v74_v22 = vpop.permute.xlu2 %73 }
  0x64   :  { %vm75_vm4 = vcmp.eq.s32.totalorder %v74_v22, %v39_v26  ;;  %vm76_vm5 = vcmp.eq.s32.totalorder %v74_v22, %v40_v27 }
  0x6c   :  { %v79_v28 = vpop.permute.xlu2 %78 }
  0x6d   :  { %v81_v38 = vsel %vm75_vm4, %v79_v28, 0.0  ;;  %v82_v39 = vsel %vm76_vm5, %v79_v28, 0.0 }
  0x76   :  { %v92_v37 = vpop.permute.xlu2 %91 }
  0x7a   :  { %v53_v24 = vpop.permute.xlu1 %52 }
  0x7b   :  { %v47_v25 = vpop.permute.xlu0 %46 }
  0x7c   :  { %vm48_vm2 = vcmp.eq.s32.totalorder %v47_v25, %v39_v26  ;;  %vm49_vm3 = vcmp.eq.s32.totalorder %v47_v25, %v40_v27 }
  0x7d   :  { %v55_v33 = vsel %vm48_vm2, %v53_v24, 0.0  ;;  %v56_v34 = vsel %vm49_vm3, %v53_v24, 0.0 }
  0x83   :  { %v66_v29 = vpop.permute.xlu1 %65 }
  0x84   :  { %v61_v30 = vpop.permute.xlu0 %60 }
  0x85   :  { %vm62_vm0 = vcmp.eq.s32.totalorder %v61_v30, %v39_v26  ;;  %vm63_vm1 = vcmp.eq.s32.totalorder %v61_v30, %v40_v27 }
  0x86   :  { %v68_v31 = vsel %vm62_vm0, %v66_v29, 0.0  ;;  %v69_v32 = vsel %vm63_vm1, %v66_v29, 0.0 }
  0x87   :  { %v70_v35 = vadd.f32 %v68_v31, %v55_v33  ;;  %v71_v36 = vadd.f32 %v69_v32, %v56_v34 }
  0x89   :  { %v83_v41 = vadd.f32 %v81_v38, %v70_v35  ;;  %v84_v42 = vadd.f32 %v82_v39, %v71_v36 }
  0x8c   :  { %v87_v40 = vpop.permute.xlu1 %86 }
  0x8d   :  { %vm88_vm6 = vcmp.eq.s32.totalorder %v87_v40, %v39_v26  ;;  %vm89_vm7 = vcmp.eq.s32.totalorder %v87_v40, %v40_v27 }
  0x8e   :  { %v94_v43 = vsel %vm88_vm6, %v92_v37, 0.0  ;;  %v95_v44 = vsel %vm89_vm7, %v92_v37, 0.0 }
  0x8f   :  { %v96_v45 = vadd.f32 %v94_v43, %v83_v41  ;;  %v97_v46 = vadd.f32 %v95_v44, %v84_v42 }
  0x91   :  { %v99_v47 = vpack.c.bf16 %v96_v45, %v96_v45  ;;  %v100_v48 = vpack.c.bf16 %v97_v46, %v97_v46 }
  0x93   :  { %237 = vmatmul.bf16.vlgmr.msra.gmra.mxu0 %v99_v47  ;;  %250 = vmatmul.bf16.vlgmr.msra.gmra.mxu1 %v100_v48 }
 0x110   :  { %v238_v49 = vpop.f32.mrf.mxu0  ;;  %v251_v50 = vpop.f32.mrf.mxu1 }
 0x111   :  { %v252_v51 = vadd.f32 %v251_v50, %v238_v49 }
 0x113   :  { %261 = vst [vmem:[#allocation6] sm:$0xff] %v252_v51 }
 0x114   :  { %272 = dma.vmem_to_hbm [thread:$0]  %s268_s1, 128, %s270_s24, [#allocation5]  }
 0x118   :  { %v240_v52 = vpop.f32.mrf.mxu0  ;;  %v253_v53 = vpop.f32.mrf.mxu1 }
 0x119   :  { %425 = dma.done.wait [#allocation5], 128  }
 0x11a   :  { %426 = vsyncadd [#allocation5], 4294967168 }
 0x11b   :  { %277 = vsyncpa [#allocation4], 1 }
 0x11c   :  { %278 = vsyncpa [#allocation5], 1 }

</bundles_post_ra>
